<compile_context>
chip_gen: v6e
topology: v6e:2x2x1
jax: 0.10.0
libtpu: 0.0.40
codegen_flags: <defaults>
</compile_context>

<pallas_src>
import jax
import jax.numpy as jnp
from jax.experimental import pallas as pl
from jax.experimental.pallas import tpu as pltpu


def _discount_black_kernel(s_ref, t_ref, loss_ref, mask_ref, psum_ref):
    ti = pl.program_id(1)  # spatial-tile index (reduction axis for psum)

    s = s_ref[...]  # (Bt, C, T)
    t = t_ref[...]  # (Bt, C, T)
    if s.dtype != jnp.float32:
        s = s.astype(jnp.float32)
    if t.dtype != jnp.float32:
        t = t.astype(jnp.float32)

    diff = s - t
    sq = diff * diff  # MSE with reduction='none'

    # mask = channel sum; >0 -> 1.0, ==0 -> 1e-6, <0 -> unchanged
    ch_sum = jnp.sum(t, axis=1, keepdims=True)  # (Bt, 1, T)
    mask = jnp.where(
        ch_sum > 0.0,
        jnp.float32(1.0),
        jnp.where(ch_sum == 0.0, jnp.float32(1e-6), ch_sum),
    )

    loss = sq * mask  # broadcast over channel axis

    loss_ref[...] = loss.astype(loss_ref.dtype)
    mask_ref[...] = mask.astype(mask_ref.dtype)

    # Lane-parallel partial sums, resident across the spatial-tile axis.
    @pl.when(ti == 0)
    def _():
        psum_ref[...] = jnp.zeros_like(psum_ref)

    psum_ref[...] += jnp.sum(loss, axis=1, keepdims=True)  # (Bt, 1, T), f32


def _choose_spatial_tile(hw, c, dtype_bytes, budget_bytes=2 * 1024 * 1024):
    """Largest lane-dense tile T with T % 128 == 0, hw % T == 0, C*T*dtype <= budget."""
    if hw % 128 != 0:
        return hw  # full extent is always a legal block shape
    max_lanes = max(128, (budget_bytes // max(c * dtype_bytes, 1)) // 128 * 128)
    t = min(hw, max_lanes)
    while t > 128 and hw % t != 0:
        t -= 128
    if hw % t != 0:
        t = hw
    return t


def _choose_batch_tile(b, c, t, dtype_bytes, budget_bytes=2 * 1024 * 1024):
    """Pack multiple batches per grid step for tiny images (Bt divides B)."""
    per_batch = max(c * t * dtype_bytes, 1)
    bt = max(1, min(b, budget_bytes // per_batch))
    while b % bt != 0:
        bt -= 1
    return bt


def discount_black_loss(source, target):
    """Returns (mean_loss, loss, mask) matching the PyTorch DiscountBlackLoss."""
    assert source.shape == target.shape
    B, C, H, W = source.shape
    HW = H * W
    out_dtype = source.dtype
    dtype_bytes = jnp.dtype(source.dtype).itemsize

    src = source.reshape(B, C, HW)
    tgt = target.reshape(B, C, HW)

    T = _choose_spatial_tile(HW, C, dtype_bytes)
    Bt = _choose_batch_tile(B, C, T, dtype_bytes)
    nB = B // Bt
    nT = HW // T

    # VMEM budget: double-buffered (src + tgt + loss) + (mask + psum) tiles,
    # with headroom for sublane padding; clamp to a safe range for all gens.
    per_step_bytes = 2 * dtype_bytes * Bt * T * (3 * C + 2)
    vmem_limit = int(min(64 * 1024 * 1024, max(32 * 1024 * 1024, 2 * per_step_bytes)))

    loss_flat, mask_flat, psum = pl.pallas_call(
        _discount_black_kernel,
        out_shape=(
            jax.ShapeDtypeStruct((B, C, HW), out_dtype),        # loss
            jax.ShapeDtypeStruct((B, 1, HW), out_dtype),        # mask
            jax.ShapeDtypeStruct((B, 1, T), jnp.float32),       # partial sums
        ),
        grid_spec=pltpu.PrefetchScalarGridSpec(
            num_scalar_prefetch=0,
            grid=(nB, nT),
            in_specs=[
                pl.BlockSpec((Bt, C, T), lambda b, t: (b, 0, t)),
                pl.BlockSpec((Bt, C, T), lambda b, t: (b, 0, t)),
            ],
            out_specs=[
                pl.BlockSpec((Bt, C, T), lambda b, t: (b, 0, t)),
                pl.BlockSpec((Bt, 1, T), lambda b, t: (b, 0, t)),
                pl.BlockSpec((Bt, 1, T), lambda b, t: (b, 0, 0)),  # resident over t
            ],
        ),
        compiler_params=pltpu.CompilerParams(
            dimension_semantics=("parallel", "arbitrary"),
            vmem_limit_bytes=vmem_limit,
        ),
    )(src, tgt)

    loss = loss_flat.reshape(B, C, H, W)
    mask = mask_flat.reshape(B, 1, H, W)
    mean_loss = jnp.sum(psum) / jnp.float32(B * C * H * W)
    return mean_loss, loss, mask


if __name__ == "__main__":
    key = jax.random.PRNGKey(0)
    k1, k2, k3 = jax.random.split(key, 3)

    B, C, H, W = 2, 4, 16, 16
    source = jax.random.uniform(k1, (B, C, H, W), dtype=jnp.float32)
    target = jax.random.uniform(k2, (B, C, H, W), dtype=jnp.float32)
    # Zero out some pixels across all channels so the 1e-6 mask branch is hit.
    drop = (jax.random.uniform(k3, (B, 1, H, W)) < 0.3).astype(jnp.float32)
    target = target * (1.0 - drop)

    mean_loss, loss, mask = discount_black_loss(source, target)
    jax.block_until_ready((mean_loss, loss, mask))

    # Reference in plain JAX (same semantics as the PyTorch module).
    ref_sq = (source - target) ** 2
    ref_sum = jnp.sum(target, axis=1, keepdims=True)
    ref_mask = jnp.where(ref_sum > 0.0, 1.0, jnp.where(ref_sum == 0.0, 1e-6, ref_sum))
    ref_loss = ref_sq * ref_mask
    ref_mean = jnp.mean(ref_loss)

    assert jnp.allclose(loss, ref_loss, atol=1e-6, rtol=1e-6)
    assert jnp.allclose(mask, ref_mask, atol=1e-6, rtol=1e-6)
    assert jnp.allclose(mean_loss, ref_mean, atol=1e-6, rtol=1e-5)

    print("KERNEL_OK")
</pallas_src>

<mosaic_0001>
module attributes {stable_mosaic.version = 11 : i64} {
  func.func @_discount_black_kernel(%arg0: i32, %arg1: i32, %arg2: memref<2x4x256xf32, #tpu.memory_space<vmem>>, %arg3: memref<2x4x256xf32, #tpu.memory_space<vmem>>, %arg4: memref<2x4x256xf32, #tpu.memory_space<vmem>>, %arg5: memref<2x1x256xf32, #tpu.memory_space<vmem>>, %arg6: memref<2x1x256xf32, #tpu.memory_space<vmem>>) attributes {dimension_semantics = [#tpu.dimension_semantics<parallel>, #tpu.dimension_semantics<arbitrary>], iteration_bounds = array<i64: 1, 1>, scalar_prefetch = 0 : i64, scratch_operands = 0 : i64, tpu.core_type = #tpu.core_type<tc>, window_params = [{transform_indices = @transform_0, window_bounds = array<i64: 2, 4, 256>}, {transform_indices = @transform_1, window_bounds = array<i64: 2, 4, 256>}, {transform_indices = @transform_2, window_bounds = array<i64: 2, 4, 256>}, {transform_indices = @transform_3, window_bounds = array<i64: 2, 1, 256>}, {transform_indices = @transform_4, window_bounds = array<i64: 2, 1, 256>}]} {
    %c0 = arith.constant 0 : index
    %c0_0 = arith.constant 0 : index
    %c0_1 = arith.constant 0 : index
    %0 = vector.load %arg2[%c0, %c0_0, %c0_1] : memref<2x4x256xf32, #tpu.memory_space<vmem>>, vector<2x4x256xf32>
    %c0_2 = arith.constant 0 : index
    %c0_3 = arith.constant 0 : index
    %c0_4 = arith.constant 0 : index
    %1 = vector.load %arg3[%c0_2, %c0_3, %c0_4] : memref<2x4x256xf32, #tpu.memory_space<vmem>>, vector<2x4x256xf32>
    %2 = arith.subf %0, %1 : vector<2x4x256xf32>
    %3 = arith.mulf %2, %2 : vector<2x4x256xf32>
    %cst = arith.constant dense<0.000000e+00> : vector<2x256xf32>
    %4 = vector.multi_reduction <add>, %1, %cst [1] : vector<2x4x256xf32> to vector<2x256xf32>
    %5 = vector.shape_cast %4 : vector<2x256xf32> to vector<2x1x256xf32>
    %cst_5 = arith.constant 0.000000e+00 : f32
    %6 = vector.broadcast %cst_5 : f32 to vector<2x1x256xf32>
    %7 = arith.cmpf ogt, %5, %6 : vector<2x1x256xf32>
    %cst_6 = arith.constant 0.000000e+00 : f32
    %8 = vector.broadcast %cst_6 : f32 to vector<2x1x256xf32>
    %9 = arith.cmpf oeq, %5, %8 : vector<2x1x256xf32>
    %cst_7 = arith.constant 9.99999997E-7 : f32
    %10 = vector.broadcast %cst_7 : f32 to vector<2x1x256xf32>
    %11 = arith.select %9, %10, %5 : vector<2x1x256xi1>, vector<2x1x256xf32>
    %cst_8 = arith.constant 1.000000e+00 : f32
    %12 = vector.broadcast %cst_8 : f32 to vector<2x1x256xf32>
    %13 = arith.select %7, %12, %11 : vector<2x1x256xi1>, vector<2x1x256xf32>
    %14 = vector.broadcast %13 : vector<2x1x256xf32> to vector<2x4x256xf32>
    %15 = arith.mulf %3, %14 : vector<2x4x256xf32>
    %c0_9 = arith.constant 0 : index
    %c0_10 = arith.constant 0 : index
    %c0_11 = arith.constant 0 : index
    %16 = vector.load %arg4[%c0_9, %c0_10, %c0_11] : memref<2x4x256xf32, #tpu.memory_space<vmem>>, vector<2x4x256xf32>
    tpu.vector_store %arg4[%c0_9, %c0_10, %c0_11], %15 {strides = array<i32>} : memref<2x4x256xf32, #tpu.memory_space<vmem>>, vector<2x4x256xf32>,
    %c0_12 = arith.constant 0 : index
    %c0_13 = arith.constant 0 : index
    %c0_14 = arith.constant 0 : index
    %17 = vector.load %arg5[%c0_12, %c0_13, %c0_14] : memref<2x1x256xf32, #tpu.memory_space<vmem>>, vector<2x1x256xf32>
    tpu.vector_store %arg5[%c0_12, %c0_13, %c0_14], %13 {strides = array<i32>} : memref<2x1x256xf32, #tpu.memory_space<vmem>>, vector<2x1x256xf32>,
    %c0_i32 = arith.constant 0 : i32
    %18 = arith.cmpi eq, %arg1, %c0_i32 : i32
    %19 = arith.extui %18 : i1 to i32
    %c0_i32_15 = arith.constant 0 : i32
    %20 = arith.cmpi ne, %19, %c0_i32_15 : i32
    scf.if %20 {
      %cst_23 = arith.constant 0.000000e+00 : f32
      %26 = vector.broadcast %cst_23 : f32 to vector<2x1x256xf32>
      %c0_24 = arith.constant 0 : index
      %c0_25 = arith.constant 0 : index
      %c0_26 = arith.constant 0 : index
      %27 = vector.load %arg6[%c0_24, %c0_25, %c0_26] : memref<2x1x256xf32, #tpu.memory_space<vmem>>, vector<2x1x256xf32>
      tpu.vector_store %arg6[%c0_24, %c0_25, %c0_26], %26 {strides = array<i32>} : memref<2x1x256xf32, #tpu.memory_space<vmem>>, vector<2x1x256xf32>,
    } else {
    }
    %c0_16 = arith.constant 0 : index
    %c0_17 = arith.constant 0 : index
    %c0_18 = arith.constant 0 : index
    %21 = vector.load %arg6[%c0_16, %c0_17, %c0_18] : memref<2x1x256xf32, #tpu.memory_space<vmem>>, vector<2x1x256xf32>
    %cst_19 = arith.constant dense<0.000000e+00> : vector<2x256xf32>
    %22 = vector.multi_reduction <add>, %15, %cst_19 [1] : vector<2x4x256xf32> to vector<2x256xf32>
    %23 = vector.shape_cast %22 : vector<2x256xf32> to vector<2x1x256xf32>
    %24 = arith.addf %21, %23 : vector<2x1x256xf32>
    %c0_20 = arith.constant 0 : index
    %c0_21 = arith.constant 0 : index
    %c0_22 = arith.constant 0 : index
    %25 = vector.load %arg6[%c0_20, %c0_21, %c0_22] : memref<2x1x256xf32, #tpu.memory_space<vmem>>, vector<2x1x256xf32>
    tpu.vector_store %arg6[%c0_20, %c0_21, %c0_22], %24 {strides = array<i32>} : memref<2x1x256xf32, #tpu.memory_space<vmem>>, vector<2x1x256xf32>,
    return
  }
  func.func @transform_0(%arg0: i32, %arg1: i32) -> (i32, i32, i32) {
    %c0_i32 = arith.constant 0 : i32
    %c0_i32_0 = arith.constant 0 : i32
    return %arg0, %c0_i32, %arg1 : i32, i32, i32
  }
  func.func @transform_1(%arg0: i32, %arg1: i32) -> (i32, i32, i32) {
    %c0_i32 = arith.constant 0 : i32
    %c0_i32_0 = arith.constant 0 : i32
    return %arg0, %c0_i32, %arg1 : i32, i32, i32
  }
  func.func @transform_2(%arg0: i32, %arg1: i32) -> (i32, i32, i32) {
    %c0_i32 = arith.constant 0 : i32
    %c0_i32_0 = arith.constant 0 : i32
    return %arg0, %c0_i32, %arg1 : i32, i32, i32
  }
  func.func @transform_3(%arg0: i32, %arg1: i32) -> (i32, i32, i32) {
    %c0_i32 = arith.constant 0 : i32
    %c0_i32_0 = arith.constant 0 : i32
    return %arg0, %c0_i32, %arg1 : i32, i32, i32
  }
  func.func @transform_4(%arg0: i32, %arg1: i32) -> (i32, i32, i32) {
    %c0_i32 = arith.constant 0 : i32
    %c0_i32_0 = arith.constant 0 : i32
    %c0_i32_1 = arith.constant 0 : i32
    return %arg0, %c0_i32, %c0_i32_0 : i32, i32, i32
  }
}

</mosaic_0001>

<bundles_post_ra>
// kernel: tpu_custom_call.1
= control target key start
LH: loop header
LB: loop body
LE: loop exit
PB: predicated region body
PF: predicated region fallthrough
CT: control target
= control target key end

     0   :  { %10 = vsyncpa [#allocation3], 0  ;;  %s510_s0 = inlined_call_operand.hbm [shape: f32[2,4,256], index: 0, kind: input, shape index: {}]   ;;  %s511_s1 = inlined_call_operand.hbm [shape: f32[2,4,256], index: 1, kind: input, shape index: {}]   ;;  %s512_s2 = inlined_call_operand.hbm [shape: f32[2,4,256], index: 2, kind: output, shape index: {0}]   ;;  %s513_s3 = inlined_call_operand.hbm [shape: f32[2,1,256], index: 3, kind: output, shape index: {1}]   ;;  %s514_s4 = inlined_call_operand.hbm [shape: f32[2,1,256], index: 4, kind: output, shape index: {2}]  }
   0x1   :  { %11 = vsyncpa [#allocation6], 0 }
   0x2   :  { %12 = vsyncpa [#allocation4], 0 }
   0x3   :  { %13 = vsyncpa [#allocation9], 0  ;;  %s403_s15 = smov [#allocation2]  }
   0x4   :  { %s19_s16 = sshll.u32 %s403_s15, 4  ;;  %s20_s16 = int_to_ptr.vmem [resolvable:$true] %s19_s16 }
   0x5   :  { %s303_s17 = scalar_lea.vmem %s20_s16, 256  ;;  %p308_p1 = scmp.lt.s32.totalorder %s20_s16, %s20_s16 }
   0x6   :  { %p304_p0 = scmp.ne.s32.totalorder %s20_s16, %s303_s17  ;;  %p309_p2 = scmp.lt.s32.totalorder %s303_s17, %s303_s17 }
   0x8   :  { %p310_p3 = por %p309_p2, %p308_p1 }
   0xa   :  { %p311_p4 = pnand %p310_p3, %p304_p0 }
   0xc   :  { %314 = shalt.err (!%p311_p4)
}
   0xd   :  { %s404_s18 = smov 128   ;;  %s405_s19 = smov 8  }
   0xe   :  { %25 = dma.hbm_to_vmem [thread:$0]  %s510_s0, 256, %s20_s16, [#allocation3], %s404_s18, %s404_s18, %s405_s19  }
   0xf   :  { %s406_s22 = smov [#allocation5]  }
  0x10   :  { %s31_s23 = sshll.u32 %s406_s22, 4  ;;  %s32_s23 = int_to_ptr.vmem [resolvable:$true] %s31_s23 }
  0x11   :  { %s323_s24 = scalar_lea.vmem %s32_s23, 256  ;;  %p328_p6 = scmp.lt.s32.totalorder %s32_s23, %s32_s23 }
  0x12   :  { %p324_p5 = scmp.ne.s32.totalorder %s32_s23, %s323_s24  ;;  %p329_p7 = scmp.lt.s32.totalorder %s323_s24, %s323_s24 }
  0x14   :  { %p330_p8 = por %p329_p7, %p328_p6 }
  0x16   :  { %p331_p9 = pnand %p330_p8, %p324_p5 }
  0x18   :  { %334 = shalt.err (!%p331_p9)
}
  0x19   :  { %37 = dma.hbm_to_vmem [thread:$0]  %s511_s1, 256, %s32_s23, [#allocation6], %s404_s18, %s404_s18, %s405_s19  }
  0x1a   :  { %395 = dma.done.wait [#allocation3], 256  }
  0x1b   :  { %396 = vsyncadd [#allocation3], 4294967040 }
  0x1c   :  { %397 = dma.done.wait [#allocation6], 256  }
  0x1d   :  { %398 = vsyncadd [#allocation6], 4294967040  ;;  %v118_v0 = vlaneseq  ;;  %v407_v2 = vmov 0.0   ;;  %vm58_vm1 = vcmask 1043456   ;;  %v46_v3 = vld [vmem:[#allocation5] sm:$0xff]  ;;  %v47_v4 = vld [vmem:[#allocation5 + $0x8] sm:$0xff] }
  0x1e   :  { %v54_v5 = vcombine.high %v46_v3, %v46_v3  ;;  %v59_v6 = vsel %vm58_vm1, %v46_v3, 0.0  ;;  %v55_v7 = vcombine.high %v47_v4, %v47_v4  ;;  %v73_v8 = vsel %vm58_vm1, %v47_v4, 0.0  ;;  %v44_v31 = vld [vmem:[#allocation2] sm:$0xff]  ;;  %v45_v32 = vld [vmem:[#allocation2 + $0x8] sm:$0xff]  ;;  %s409_s0 = smov [#allocation7]   ;;  %s410_s27 = smov [#allocation8]  }
  0x1f   :  { %vm451_vm0 = vcmp.lt.s32.totalorder %v118_v0, 256  ;;  %v60_v9 = vrot.slane %v59_v6, 4  ;;  %v74_v10 = vrot.slane %v73_v8, 4  ;;  %v408_v21 = vmov 1966171168   ;;  %s238_s1 = sshll.u32 %s409_s0, 4  ;;  %s239_s1 = int_to_ptr.vmem [resolvable:$true] %s238_s1 }
  0x20   :  { %155 = vst.msk [vmem:[#allocation10] sm:$0x3] %vm451_vm0, %v407_v2  ;;  %156 = vst.msk [vmem:[#allocation10 + $0x2] sm:$0x3] %vm451_vm0, %v407_v2  ;;  %v66_v11 = vsel %vm58_vm1, %v54_v5, 0.0  ;;  %v80_v12 = vsel %vm58_vm1, %v55_v7, 0.0  ;;  %v116_v22 = vunpack.c.l.s4 %v408_v21  ;;  %v48_v39 = vsub.f32 %v44_v31, %v46_v3  ;;  %p340_p11 = scmp.lt.s32.totalorder %s239_s1, %s239_s1 }
  0x21   :  { %v61_v13 = vadd.f32 %v60_v9, %v59_v6  ;;  %v67_v14 = vrot.slane %v66_v11, 4  ;;  %v75_v15 = vadd.f32 %v74_v10, %v73_v8  ;;  %v81_v16 = vrot.slane %v80_v12, 4  ;;  %s250_s28 = sshll.u32 %s410_s27, 4  ;;  %s335_s29 = scalar_lea.vmem %s239_s1, 256  ;;  %s471_s28 = int_to_ptr.vmem [resolvable:$true] %s250_s28 }
  0x22   :  { %v117_v33 = vunpack.c.0.s8 %v116_v22  ;;  %v119_v34 = vshrl.u32 %v118_v0, 7  ;;  %v49_v40 = vsub.f32 %v45_v32, %v47_v4  ;;  %v50_v48 = vmul.f32 %v48_v39, %v48_v39  ;;  %p336_p10 = scmp.ne.s32.totalorder %s239_s1, %s335_s29  ;;  %p341_p12 = scmp.lt.s32.totalorder %s335_s29, %s335_s29 }
  0x23   :  { %v62_v17 = vrot.slane %v61_v13, 2  ;;  %v68_v18 = vadd.f32 %v67_v14, %v66_v11  ;;  %v76_v19 = vrot.slane %v75_v15, 2  ;;  %v82_v20 = vadd.f32 %v81_v16, %v80_v12 }
  0x24   :  { %v463_v43 = vsub.s32 %v117_v33, %v119_v34  ;;  %v51_v52 = vmul.f32 %v49_v40, %v49_v40  ;;  %p342_p13 = por %p341_p12, %p340_p11 }
  0x25   :  { %v63_v23 = vadd.f32 %v62_v17, %v61_v13  ;;  %v69_v24 = vrot.slane %v68_v18, 2  ;;  %v77_v25 = vadd.f32 %v76_v19, %v75_v15  ;;  %v83_v26 = vrot.slane %v82_v20, 2 }
  0x26   :  { %p343_p0 = pnand %p342_p13, %p336_p10 }
  0x27   :  { %v64_v27 = vrot.slane %v63_v23, 1  ;;  %v70_v28 = vadd.f32 %v69_v24, %v68_v18  ;;  %v78_v29 = vrot.slane %v77_v25, 1  ;;  %v84_v30 = vadd.f32 %v83_v26, %v82_v20 }
  0x29   :  { %v65_v35 = vadd.f32 %v64_v27, %v63_v23  ;;  %v71_v36 = vrot.slane %v70_v28, 1  ;;  %v79_v37 = vadd.f32 %v78_v29, %v77_v25  ;;  %v85_v38 = vrot.slane %v84_v30, 1 }
  0x2b   :  { %v72_v41 = vadd.f32 %v71_v36, %v70_v28  ;;  %vm87_vm2 = vcmp.gt.f32.partialorder %v65_v35, 0.0  ;;  %vm91_vm3 = vcmp.eq.f32.partialorder %v65_v35, 0.0  ;;  %v86_v42 = vadd.f32 %v85_v38, %v84_v30 }
  0x2c   :  { %v95_v44 = vsel %vm91_vm3, 1e-06, %v65_v35  ;;  %vm89_vm4 = vcmp.gt.f32.partialorder %v79_v37, 0.0  ;;  %vm93_vm5 = vcmp.eq.f32.partialorder %v79_v37, 0.0 }
  0x2d   :  { %vm88_vm6 = vcmp.gt.f32.partialorder %v72_v41, 0.0  ;;  %vm92_vm7 = vcmp.eq.f32.partialorder %v72_v41, 0.0  ;;  %v99_v45 = vsel %vm87_vm2, 1.0, %v95_v44  ;;  %vm90_vm8 = vcmp.gt.f32.partialorder %v86_v42, 0.0 }
  0x2e   :  { %v96_v46 = vsel %vm92_vm7, 1e-06, %v72_v41  ;;  %vm94_vm9 = vcmp.eq.f32.partialorder %v86_v42, 0.0  ;;  %v97_v47 = vsel %vm93_vm5, 1e-06, %v79_v37 }
  0x2f   :  { %v100_v49 = vsel %vm88_vm6, 1.0, %v96_v46  ;;  %v98_v50 = vsel %vm94_vm9, 1e-06, %v86_v42  ;;  %v101_v51 = vsel %vm89_vm4, 1.0, %v97_v47 }
  0x30   :  { %v107_v53 = vcombine.low %v99_v45, %v100_v49  ;;  %v102_v54 = vsel %vm90_vm8, 1.0, %v98_v50 }
  0x31   :  { %v108_v55 = vcombine.low %v101_v51, %v102_v54 }
  0x32   :  { %v121_v56 = vrot.slane %v107_v53, %v463_v43  ;;  %v111_v57 = vmul.f32 %v107_v53, %v50_v48 }
  0x33   :  { %v135_v58 = vrot.slane %v108_v55, %v463_v43  ;;  %v112_v59 = vmul.f32 %v108_v55, %v51_v52 }
  0x34   :  { %v128_v60 = vrot.slane %v121_v56, %v463_v43  ;;  %113 = vst [vmem:[#allocation7] sm:$0xff] %v111_v57  ;;  %v161_v61 = vcombine.high %v111_v57, %v111_v57  ;;  %v165_v62 = vsel %vm58_vm1, %v111_v57, 0.0 }
  0x35   :  { %v142_v63 = vrot.slane %v135_v58, %v463_v43  ;;  %v166_v0 = vrot.slane %v165_v62, 4  ;;  %114 = vst [vmem:[#allocation7 + $0x8] sm:$0xff] %v112_v59  ;;  %v162_v2 = vcombine.high %v112_v59, %v112_v59  ;;  %v179_v3 = vsel %vm58_vm1, %v112_v59, 0.0 }
  0x36   :  { %149 = vst.msk [vmem:[#allocation8] sm:$0x3] %vm451_vm0, %v128_v60  ;;  %v172_v4 = vsel %vm58_vm1, %v161_v61, 0.0  ;;  %v180_v5 = vrot.slane %v179_v3, 4 }
  0x37   :  { %346 = shalt.err (!%p343_p0)
}
  0x38   :  { %244 = dma.vmem_to_hbm [thread:$0]  %s239_s1, 256, %s512_s2, [#allocation4], %s404_s18, %s404_s18, %s405_s19   ;;  %150 = vst.msk [vmem:[#allocation8 + $0x2] sm:$0x3] %vm451_vm0, %v142_v63  ;;  %v167_v6 = vadd.f32 %v166_v0, %v165_v62  ;;  %v173_v7 = vrot.slane %v172_v4, 4  ;;  %v186_v8 = vsel %vm58_vm1, %v162_v2, 0.0  ;;  %v181_v9 = vadd.f32 %v180_v5, %v179_v3 }
  0x39   :  { %v187_v10 = vrot.slane %v186_v8, 4  ;;  %s355_s6 = scalar_lea.vmem %s471_s28, 64  ;;  %p360_p2 = scmp.lt.s32.totalorder %s471_s28, %s471_s28 }
  0x3a   :  { %p356_p1 = scmp.ne.s32.totalorder %s471_s28, %s355_s6  ;;  %p361_p3 = scmp.lt.s32.totalorder %s355_s6, %s355_s6 }
  0x3c   :  { %p362_p4 = por %p361_p3, %p360_p2 }
  0x3e   :  { %p363_p5 = pnand %p362_p4, %p356_p1 }
  0x40   :  { %366 = shalt.err (!%p363_p5)
}
  0x41   :  { %s411_s7 = smov 32   ;;  %s412_s2 = smov 2   ;;  %v168_v11 = vrot.slane %v167_v6, 2  ;;  %v174_v12 = vadd.f32 %v173_v7, %v172_v4  ;;  %v182_v13 = vrot.slane %v181_v9, 2  ;;  %v188_v14 = vadd.f32 %v187_v10, %v186_v8  ;;  %v157_v32 = vld [vmem:[#allocation10] sm:$0x3] }
  0x42   :  { %256 = dma.vmem_to_hbm [thread:$0]  %s471_s28, 64, %s513_s3, [#allocation9], %s411_s7, %s411_s7, %s412_s2   ;;  %v158_v35 = vld [vmem:[#allocation10 + $0x2] sm:$0x3] }
  0x43   :  { %v169_v15 = vadd.f32 %v168_v11, %v167_v6  ;;  %v175_v16 = vrot.slane %v174_v12, 2  ;;  %v183_v17 = vadd.f32 %v182_v13, %v181_v9  ;;  %v189_v18 = vrot.slane %v188_v14, 2  ;;  %s413_s3 = smov [#allocation10]  }
  0x44   :  { %s262_s10 = sshll.u32 %s413_s3, 4  ;;  %s263_s10 = int_to_ptr.vmem [resolvable:$true] %s262_s10 }
  0x45   :  { %v170_v19 = vrot.slane %v169_v15, 1  ;;  %v176_v20 = vadd.f32 %v175_v16, %v174_v12  ;;  %v184_v21 = vrot.slane %v183_v17, 1  ;;  %v190_v22 = vadd.f32 %v189_v18, %v188_v14  ;;  %s375_s11 = scalar_lea.vmem %s263_s10, 64  ;;  %p380_p7 = scmp.lt.s32.totalorder %s263_s10, %s263_s10 }
  0x46   :  { %p376_p6 = scmp.ne.s32.totalorder %s263_s10, %s375_s11  ;;  %p381_p8 = scmp.lt.s32.totalorder %s375_s11, %s375_s11 }
  0x47   :  { %v171_v23 = vadd.f32 %v170_v19, %v169_v15  ;;  %v177_v24 = vrot.slane %v176_v20, 1  ;;  %v185_v25 = vadd.f32 %v184_v21, %v183_v17  ;;  %v191_v26 = vrot.slane %v190_v22, 1 }
  0x48   :  { %p382_p9 = por %p381_p8, %p380_p7 }
  0x49   :  { %v178_v27 = vadd.f32 %v177_v24, %v176_v20  ;;  %v192_v28 = vadd.f32 %v191_v26, %v190_v22 }
  0x4a   :  { %p383_p10 = pnand %p382_p9, %p376_p6 }
  0x4b   :  { %v197_v29 = vcombine.low %v171_v23, %v178_v27  ;;  %v212_v30 = vcombine.low %v185_v25, %v192_v28 }
  0x4d   :  { %v204_v31 = vrot.slane %v197_v29, %v463_v43  ;;  %v219_v33 = vrot.slane %v212_v30, %v463_v43 }
  0x4f   :  { %v211_v34 = vrot.slane %v204_v31, %v463_v43  ;;  %v226_v36 = vrot.slane %v219_v33, %v463_v43 }
  0x51   :  { %v229_v37 = vadd.f32 %v211_v34, %v157_v32  ;;  %v230_v38 = vadd.f32 %v226_v36, %v158_v35 }
  0x53   :  { %231 = vst.msk [vmem:[#allocation10] sm:$0x3] %vm451_vm0, %v229_v37  ;;  %232 = vst.msk [vmem:[#allocation10 + $0x2] sm:$0x3] %vm451_vm0, %v230_v38 }
  0x54   :  { %386 = shalt.err (!%p383_p10)
}
  0x55   :  { %268 = dma.vmem_to_hbm [thread:$0]  %s263_s10, 64, %s514_s4, [#allocation9], %s411_s7, %s411_s7, %s412_s2  }
  0x56   :  { %399 = dma.done.wait [#allocation4], 256  }
  0x57   :  { %400 = vsyncadd [#allocation4], 4294967040 }
  0x58   :  { %401 = dma.done.wait [#allocation9], 128  }
  0x59   :  { %402 = vsyncadd [#allocation9], 4294967168 }
  0x5a   :  { %278 = vsyncpa [#allocation3], 1 }
  0x5b   :  { %279 = vsyncpa [#allocation6], 1 }
  0x5c   :  { %280 = vsyncpa [#allocation4], 1 }
  0x5d   :  { %281 = vsyncpa [#allocation9], 1 }

</bundles_post_ra>
